<compile_context>
chip_gen: v7x
topology: tpu7x:2x2x1
jax: 0.10.0
libtpu: 0.0.40
codegen_flags: <defaults>
</compile_context>

<pallas_src>
import jax
import jax.numpy as jnp
from jax.experimental import pallas as pl
from jax.experimental.pallas import tpu as pltpu

_FALLBACK_LANE = 512          # lane width for the ragged-D fallback (multiple of 128)
_PER_BUFFER_BYTES = 4 << 20   # ~4 MiB per VMEM buffer; x6 (3 arrays, double-buffered) = 24 MiB
_VMEM_LIMIT_BYTES = 48 << 20  # explicit ceiling; fits v5e/v6e (128 MiB) and v7x (64 MiB) VMEM
_SMALL_INPUT_BYTES = 1 << 20  # below this, plain fused XLA beats the kernel launch cost


def _sublane(itemsize):
    # Sub-32-bit dtypes pack along sublanes: f32 -> 8, bf16 -> 16, int8/fp8 -> 32.
    return {4: 8, 2: 16, 1: 32}.get(itemsize, 8)


def _easy_mlp_kernel(src_ref, pos_ref, out_ref):
    s = src_ref[...]
    p = pos_ref[...]
    # src2 = src + pos ; src = src + dropout(src2)   (dropout == identity in eval)
    # TODO(synk): training-mode dropout (stochastic mask via pltpu.prng_*) not implemented.
    out_ref[...] = s + (s + p)


def _pick_tile_rows(rows, lane, itemsize):
    sub = _sublane(itemsize)
    bytes_per_row = lane * itemsize
    tr = max(sub, (_PER_BUFFER_BYTES // bytes_per_row) // sub * sub)
    if tr >= rows:
        if rows >= 2 * sub:
            # Keep at least 2 grid steps so a parallel grid axis can shard
            # across both TensorCores on v7x (no-op on v5e/v6e).
            half = -(-rows // 2)                 # ceil(rows / 2)
            tr = -(-half // sub) * sub           # round up to a sublane multiple
        else:
            tr = rows                            # full-extent block: always legal
    return tr


def _run_tiled(src2d, pos2d, tr, alias_src_output):
    rows, lane = src2d.shape
    grid_rows = pl.cdiv(rows, tr)
    spec = pl.BlockSpec((tr, lane), lambda i: (i, 0))
    return pl.pallas_call(
        _easy_mlp_kernel,
        out_shape=jax.ShapeDtypeStruct((rows, lane), src2d.dtype),
        grid_spec=pltpu.PrefetchScalarGridSpec(
            num_scalar_prefetch=0,
            grid=(grid_rows,),
            in_specs=[spec, spec],
            out_specs=spec,
        ),
        compiler_params=pltpu.CompilerParams(
            dimension_semantics=("parallel",),
            vmem_limit_bytes=_VMEM_LIMIT_BYTES,
        ),
        # Only beneficial when the caller donates `src` at its jit boundary;
        # otherwise XLA would insert a defensive copy, so it is opt-in.
        input_output_aliases=({0: 0} if alias_src_output else {}),
    )(src2d, pos2d)


def easy_mlp_forward(src, pos, *, force_pallas=False, alias_src_output=False):
    """EasyMLP.forward in eval mode. src, pos: (S, B, D) -> (S, B, D)."""
    assert src.shape == pos.shape, (src.shape, pos.shape)
    out_dtype = jnp.result_type(src.dtype, pos.dtype)
    src = src.astype(out_dtype)
    pos = pos.astype(out_dtype)

    orig_shape = src.shape
    total = src.size
    itemsize = jnp.dtype(out_dtype).itemsize

    # Tiny inputs: a single fused XLA pass beats the pallas_call launch +
    # wrapper reshapes. The kernel is for the large (bandwidth-bound) regime.
    if not force_pallas and total * itemsize < _SMALL_INPUT_BYTES:
        return src + (src + pos)

    d = orig_shape[-1]
    if d % 128 == 0:
        # Fast path: lane-dense (S*B, D) view. Free reshape, no pad, no slice,
        # so no extra HBM re-streaming around the kernel.
        rows = total // d
        tr = _pick_tile_rows(rows, d, itemsize)
        out2d = _run_tiled(src.reshape(rows, d), pos.reshape(rows, d), tr,
                           alias_src_output)
        return out2d.reshape(orig_shape)

    # Ragged trailing dim: fall back to a padded flat (rows, 512) slab.
    lane = _FALLBACK_LANE
    rows = pl.cdiv(total, lane)
    tr = _pick_tile_rows(rows, lane, itemsize)
    padded_total = rows * lane
    src_flat = src.reshape(-1)
    pos_flat = pos.reshape(-1)
    if padded_total != total:
        pad = padded_total - total
        src_flat = jnp.pad(src_flat, (0, pad))
        pos_flat = jnp.pad(pos_flat, (0, pad))
    out2d = _run_tiled(src_flat.reshape(rows, lane), pos_flat.reshape(rows, lane),
                       tr, alias_src_output)
    return out2d.reshape(-1)[:total].reshape(orig_shape)


def _reference(src, pos):
    # Pure-JAX mirror of the PyTorch forward (eval mode).
    s = jnp.transpose(src, (1, 0, 2))
    q = jnp.transpose(pos, (1, 0, 2))
    s2 = s + q
    s = s + s2
    # self.norm(s) is computed in PyTorch but its result is discarded.
    return jnp.transpose(s, (1, 0, 2))


if __name__ == "__main__":
    key = jax.random.PRNGKey(0)
    ks, kq = jax.random.split(key, 2)

    # Small shapes consistent with the module (default d_model = 512).
    S, B, D = 8, 2, 512
    src = jax.random.normal(ks, (S, B, D), jnp.float32)
    pos = jax.random.normal(kq, (S, B, D), jnp.float32)

    # Fast lane-dense path (D % 128 == 0), forced through the Pallas kernel.
    out = easy_mlp_forward(src, pos, force_pallas=True)
    out = jax.block_until_ready(out)
    ref = _reference(src, pos)
    assert out.shape == (S, B, D)
    assert out.dtype == src.dtype
    assert jnp.allclose(out, ref, atol=1e-6, rtol=1e-6)

    # Ragged trailing dim exercises the padded fallback path.
    Dr = 200
    src_r = jax.random.normal(ks, (S, B, Dr), jnp.float32)
    pos_r = jax.random.normal(kq, (S, B, Dr), jnp.float32)
    out_r = jax.block_until_ready(easy_mlp_forward(src_r, pos_r, force_pallas=True))
    assert jnp.allclose(out_r, _reference(src_r, pos_r), atol=1e-6, rtol=1e-6)

    # bf16 sanity check (dtype-aware sublane rounding / packing path).
    src_b = src.astype(jnp.bfloat16)
    pos_b = pos.astype(jnp.bfloat16)
    out_b = jax.block_until_ready(easy_mlp_forward(src_b, pos_b, force_pallas=True))
    assert out_b.dtype == jnp.bfloat16
    assert jnp.allclose(out_b.astype(jnp.float32),
                        _reference(src_b, pos_b).astype(jnp.float32),
                        atol=1e-2, rtol=1e-2)

    print("KERNEL_OK")
</pallas_src>

<mosaic_0001>
module attributes {stable_mosaic.version = 11 : i64} {
  func.func @_easy_mlp_kernel(%arg0: i32, %arg1: memref<8x512xf32, #tpu.memory_space<vmem>>, %arg2: memref<8x512xf32, #tpu.memory_space<vmem>>, %arg3: memref<8x512xf32, #tpu.memory_space<vmem>>) attributes {dimension_semantics = [#tpu.dimension_semantics<parallel>], iteration_bounds = array<i64: 2>, scalar_prefetch = 0 : i64, scratch_operands = 0 : i64, tpu.core_type = #tpu.core_type<tc>, window_params = [{transform_indices = @transform_0, window_bounds = array<i64: 8, 512>}, {transform_indices = @transform_1, window_bounds = array<i64: 8, 512>}, {transform_indices = @transform_2, window_bounds = array<i64: 8, 512>}]} {
    %c0 = arith.constant 0 : index
    %c0_0 = arith.constant 0 : index
    %0 = vector.load %arg1[%c0, %c0_0] : memref<8x512xf32, #tpu.memory_space<vmem>>, vector<8x512xf32>
    %c0_1 = arith.constant 0 : index
    %c0_2 = arith.constant 0 : index
    %1 = vector.load %arg2[%c0_1, %c0_2] : memref<8x512xf32, #tpu.memory_space<vmem>>, vector<8x512xf32>
    %2 = arith.addf %0, %1 : vector<8x512xf32>
    %3 = arith.addf %0, %2 : vector<8x512xf32>
    %c0_3 = arith.constant 0 : index
    %c0_4 = arith.constant 0 : index
    %4 = vector.load %arg3[%c0_3, %c0_4] : memref<8x512xf32, #tpu.memory_space<vmem>>, vector<8x512xf32>
    tpu.vector_store %arg3[%c0_3, %c0_4], %3 {strides = array<i32>} : memref<8x512xf32, #tpu.memory_space<vmem>>, vector<8x512xf32>,
    return
  }
  func.func @transform_0(%arg0: i32) -> (i32, i32) {
    %c0_i32 = arith.constant 0 : i32
    %c0_i32_0 = arith.constant 0 : i32
    return %arg0, %c0_i32 : i32, i32
  }
  func.func @transform_1(%arg0: i32) -> (i32, i32) {
    %c0_i32 = arith.constant 0 : i32
    %c0_i32_0 = arith.constant 0 : i32
    return %arg0, %c0_i32 : i32, i32
  }
  func.func @transform_2(%arg0: i32) -> (i32, i32) {
    %c0_i32 = arith.constant 0 : i32
    %c0_i32_0 = arith.constant 0 : i32
    return %arg0, %c0_i32 : i32, i32
  }
}

</mosaic_0001>

<bundles_post_ra>
// kernel: tpu_custom_call.1
= control target key start
LH: loop header
LB: loop body
LE: loop exit
PB: predicated region body
PF: predicated region fallthrough
CT: control target
= control target key end

     0   :  { %7 = vsyncpa [#allocation3], 0  ;;  %s757_s0 = inlined_call_operand.hbm [shape: f32[16,512], index: 0, kind: input, shape index: {}]   ;;  %s758_s1 = inlined_call_operand.hbm [shape: f32[16,512], index: 1, kind: input, shape index: {}]   ;;  %s759_s2 = inlined_call_operand.hbm [shape: f32[16,512], index: 2, kind: output, shape index: {}]  }
   0x1   :  { %9 = vsyncpa [#allocation3 + $0x1], 0 }
   0x2   :  { %10 = vsyncpa [#allocation6], 0 }
   0x3   :  { %12 = vsyncpa [#allocation6 + $0x1], 0 }
   0x4   :  { %13 = vsyncpa [#allocation4], 0 }
   0x5   :  { %15 = vsyncpa [#allocation4 + $0x1], 0  ;;  %s548_s9 = smov 0   ;;  %s550_s10 = smov 0  }
   0x6   :  { %s552_s11 = smov 0   ;;  %s554_s12 = smov 0  }
   0x7 LB: > { %s569_s13 = sadd.s32 4294967295, %s528_s12   ;;  %s326_s14 = sadd.s32 4294967294, %s528_s12   ;;  %s528_s12 = sphi %s554_s12, %s778_s12   ;;  %s524_s11 = sphi %s552_s11, %s777_s11   ;;  %s520_s10 = sphi %s550_s10, %s776_s10   ;;  %s516_s9 = sphi %s548_s9, %s775_s9  }
   0x8   : > { %s573_s15 = sadd.s32 1, %s528_s12   ;;  %s28_s16 = sadd.s32 1, %s524_s11 }
   0x9   : > { %s25_s17 = ssub.s32 %s528_s12, %s573_s15  ;;  %p35_p0 = scmp.ne.s32.totalorder %s524_s11, %s520_s10 }
   0xa   : > { %p26_p1 = scmp.eq.s32.totalorder %s25_s17, 0  ;;  %p36_p2 = scmp.eq.s32.totalorder %s528_s12, 0 }
   0xb   : > { %p41_p3 = scmp.ne.s32.totalorder %s520_s10, %s516_s9  ;;  %p42_p4 = scmp.eq.s32.totalorder %s569_s13, 0 }
   0xc   : > { %s585_s18 = scalar_select %p26_p1, %s524_s11, %s28_s16  }
   0xd   : > { %p587_p5 = por %p36_p2, %p35_p0  ;;  %p591_p6 = por %p42_p4, %p41_p3 }
   0xe   : > { %p91_p7 = scmp.eq.s32.totalorder %s569_s13, 1  ;;  %p97_p8 = scmp.eq.s32.totalorder %s326_s14, 1 }
   0xf   : > { %s763_s20 = scalar_select %p591_p6, 1, 0 }
  0x10   : > { %p364_p10 = scmp.lt.s32.totalorder %s528_s12, 2  ;;  %p598_p11 = por %p91_p7, %p35_p0 }
  0x11   : > { %p602_p12 = por %p97_p8, %p41_p3  ;;  %s607_s23 = sand.u32 1, %s524_s11  }
  0x12   : > { %s764_s21 = scalar_select %p598_p11, 1, 0 }
  0x13   : > { %s765_s22 = scalar_select %p602_p12, 1, 0 }
  0x14   : > { %s344_s24 = sshll.u32 %s528_s12, 9  ;;  %s329_s25 = sshll.u32 %s607_s23, 5 }
  0x15   : > { %s616_s28 = scalar_lea.hbm %s757_s0, %s344_s24  ;;  %s121_s29 = scalar_lea.vmem [#allocation2], %s329_s25 }
  0x16   : > { %s129_s30 = sshll.u32 %s121_s29, 4  ;;  %p622_p13 = pnand %p364_p10, %p587_p5  ;;  %s626_s30 = int_to_ptr.vmem [resolvable:$true] %s129_s30 }
  0x17   : > { %s118_s4 = scalar_lea.sflag [#allocation3], %s607_s23  ;;  %s398_s5 = scalar_lea.hbm %s616_s28, 512 }
  0x18   : > { %p399_p2 = scmp.ne.s32.totalorder %s616_s28, %s398_s5  ;;  %p400_p3 = pneg %p622_p13 }
  0x19   : > { %s403_s8 = scalar_lea.hbm %s757_s0, 1024  ;;  %p404_p5 = scmp.lt.u32.totalorder %s616_s28, %s757_s0 }
  0x1a   : > { %p401_p4 = pnand %p400_p3, %p399_p2  ;;  %p405_p8 = scmp.lt.u32.totalorder %s403_s8, %s398_s5 }
  0x1b   : > { %p407_p9 = scmp.lt.u32.totalorder %s398_s5, %s616_s28 }
  0x1c   : > { %p402_p7 = pneg %p401_p4  ;;  %p406_p10 = por %p405_p8, %p404_p5 }
  0x1e   : > { %p408_p0 = por %p407_p9, %p406_p10 }
  0x20   : > { %p409_p1 = pnand %p408_p0, %p402_p7 }
  0x22   : > { %412 = shalt.err (!%p409_p1)
}
  0x23   : > { %s413_s17 = scalar_lea.vmem %s626_s30, 512  ;;  %s530_s19 = smov [#allocation2]  }
  0x24   : > { %p414_p2 = scmp.ne.s32.totalorder %s626_s30, %s413_s17  ;;  %s418_s26 = sshll.u32 %s530_s19, 4  ;;  %s419_s26 = int_to_ptr.vmem [resolvable:$false] %s418_s26 }
  0x25   : > { %s420_s27 = scalar_lea.vmem %s419_s26, 1024  ;;  %p421_p11 = scmp.lt.s32.totalorder %s626_s30, %s419_s26 }
  0x26   : > { %p416_p4 = pnand %p414_p2, %p400_p3  ;;  %p422_p5 = scmp.lt.s32.totalorder %s420_s27, %s413_s17 }
  0x28   : > { %p417_p12 = pneg %p416_p4  ;;  %p423_p8 = por %p422_p5, %p421_p11 }
  0x2a   : > { %p424_p9 = pnand %p423_p8, %p417_p12 }
  0x2c   : > { %427 = shalt.err (!%p424_p9)
}
  0x2d   : > { %356 = dma.hbm_to_vmem [thread:$0]  (!%p622_p13), %s616_s28, 512, %s626_s30, %s118_s4  }
  0x2e   : > { %p767_p0 = scmp.lt.s32.totalorder %s528_s12, 3  ;;  %p768_p1 = scmp.ge.s32.totalorder %s528_s12, 1 }
  0x2f   : > { %s669_s7 = scalar_lea.hbm %s758_s1, %s344_s24  ;;  %s140_s8 = scalar_lea.vmem [#allocation5], %s329_s25 }
  0x30   : > { %p660_p7 = pnand %p768_p1, %p767_p0  ;;  %s148_s14 = sshll.u32 %s140_s8, 4  ;;  %s149_s14 = int_to_ptr.vmem [resolvable:$true] %s148_s14 }
  0x31   : > { %s137_s28 = scalar_lea.sflag [#allocation6], %s607_s23  ;;  %s428_s30 = scalar_lea.hbm %s669_s7, 512 }
  0x32   : > { %s769_s29 = scalar_select %p660_p7, 1, 0 }
  0x33   : > { %p429_p11 = scmp.ne.s32.totalorder %s669_s7, %s428_s30  ;;  %s433_s24 = scalar_lea.hbm %s758_s1, 1024 }
  0x34   : > { %p434_p2 = scmp.lt.u32.totalorder %s669_s7, %s758_s1  ;;  %p435_p4 = scmp.lt.u32.totalorder %s433_s24, %s428_s30 }
  0x35   : > { %p431_p12 = pnand %p429_p11, %p400_p3  ;;  %p437_p8 = scmp.lt.u32.totalorder %s428_s30, %s669_s7 }
  0x36   : > { %p436_p5 = por %p435_p4, %p434_p2 }
  0x37   : > { %p432_p10 = pneg %p431_p12 }
  0x38   : > { %p438_p9 = por %p437_p8, %p436_p5 }
  0x3a   : > { %p439_p0 = pnand %p438_p9, %p432_p10 }
  0x3c   : > { %442 = shalt.err (!%p439_p0)
}
  0x3d   : > { %s443_s23 = scalar_lea.vmem %s149_s14, 512  ;;  %s531_s25 = smov [#allocation5]  }
  0x3e   : > { %p444_p1 = scmp.ne.s32.totalorder %s149_s14, %s443_s23  ;;  %s448_s26 = sshll.u32 %s531_s25, 4  ;;  %s449_s26 = int_to_ptr.vmem [resolvable:$false] %s448_s26 }
  0x3f   : > { %s450_s27 = scalar_lea.vmem %s449_s26, 1024  ;;  %p451_p6 = scmp.lt.s32.totalorder %s149_s14, %s449_s26 }
  0x40   : > { %p446_p11 = pnand %p444_p1, %p400_p3  ;;  %p452_p7 = scmp.lt.s32.totalorder %s450_s27, %s443_s23 }
  0x42   : > { %p447_p12 = pneg %p446_p11  ;;  %p453_p2 = por %p452_p7, %p451_p6 }
  0x44   : > { %p454_p4 = pnand %p453_p2, %p447_p12 }
  0x46   : > { %457 = shalt.err (!%p454_p4)
}
  0x47   : > { %359 = dma.hbm_to_vmem [thread:$0]  (!%p622_p13), %s669_s7, 512, %s149_s14, %s137_s28  }
  0x48   : > { %p770_p10 = scmp.ne.s32.totalorder %s769_s29, 0 }
  0x49   : > { %s696_s5 = sand.u32 (!%p770_p10), 1, %s520_s10   ;;  %p771_p3 = scmp.ne.s32.totalorder (!%p770_p10), %s763_s20, 0 }
  0x4a   : > { %157 = sbr.rel (%p770_p10) target bundleno = 110 (0x6e), region = 28  ;;  %s336_s6 = sshll.u32 (!%p770_p10), %s696_s5, 5 }
  0x4b   : > { %s160_s8 = scalar_lea.sflag (!%p770_p10), [#allocation3], %s696_s5  ;;  %s163_s30 = scalar_lea.vmem (!%p770_p10), [#allocation2], %s336_s6 }
  0x51   : > { %503 = dma.done.wait (%p771_p3), %s160_s8, 512  }
  0x52   : > { %505 = vsyncadd (%p771_p3), %s160_s8, 4294966784  ;;  %s169_s3 = scalar_lea.sflag [#allocation6], %s696_s5  ;;  %s172_s7 = scalar_lea.vmem [#allocation5], %s336_s6 }
  0x53   : > { %507 = dma.done.wait (%p771_p3), %s169_s3, 512  }
  0x54   : > { %509 = vsyncadd (%p771_p3), %s169_s3, 4294966784  ;;  %v198_v0 = vld [vmem:[%s163_s30] sm:$0xff]  ;;  %v199_v2 = vld [vmem:[%s163_s30 + $0x8] sm:$0xff]  ;;  %s197_s29 = scalar_lea.vmem [#allocation7], %s336_s6  ;;  %s346_s28 = sshll.u32 %s569_s13, 9 }
  0x55   : > { %v202_v1 = vld [vmem:[%s172_s7] sm:$0xff]  ;;  %v203_v4 = vld [vmem:[%s172_s7 + $0x8] sm:$0xff]  ;;  %v200_v5 = vld [vmem:[%s163_s30 + $0x10] sm:$0xff]  ;;  %s233_s14 = sshll.u32 %s197_s29, 4  ;;  %s715_s16 = scalar_lea.hbm %s759_s2, %s346_s28  ;;  %s710_s14 = int_to_ptr.vmem [resolvable:$true] %s233_s14 }
  0x56   : > { %v206_v3 = vadd.f32 %v202_v1, %v198_v0  ;;  %v204_v6 = vld [vmem:[%s172_s7 + $0x10] sm:$0xff]  ;;  %v207_v7 = vadd.f32 %v203_v4, %v199_v2  ;;  %v201_v9 = vld [vmem:[%s163_s30 + $0x18] sm:$0xff]  ;;  %s219_s13 = scalar_lea.sflag [#allocation4], %s696_s5  ;;  %s458_s24 = scalar_lea.vmem %s710_s14, 512 }
  0x57   : > { %v208_v8 = vadd.f32 %v204_v6, %v200_v5  ;;  %v205_v10 = vld [vmem:[%s172_s7 + $0x18] sm:$0xff]  ;;  %p459_p6 = scmp.ne.s32.totalorder %s710_s14, %s458_s24  ;;  %p772_p13 = scmp.ne.s32.totalorder %s764_s21, 0 }
  0x58   : > { %v210_v11 = vadd.f32 %v206_v3, %v198_v0  ;;  %v209_v12 = vadd.f32 %v205_v10, %v201_v9  ;;  %v211_v13 = vadd.f32 %v207_v7, %v199_v2  ;;  %s532_s17 = smov [#allocation7]  }
  0x59   : > { %v212_v14 = vadd.f32 %v208_v8, %v200_v5  ;;  %p460_p7 = pnand %p459_p6, %p772_p13  ;;  %s462_s19 = sshll.u32 %s532_s17, 4  ;;  %s463_s19 = int_to_ptr.vmem [resolvable:$false] %s462_s19 }
  0x5a   : > { %214 = vst [vmem:[%s197_s29] sm:$0xff] %v210_v11  ;;  %v213_v15 = vadd.f32 %v209_v12, %v201_v9  ;;  %215 = vst [vmem:[%s197_s29 + $0x8] sm:$0xff] %v211_v13  ;;  %s464_s23 = scalar_lea.vmem %s463_s19, 1024  ;;  %p465_p8 = scmp.lt.s32.totalorder %s710_s14, %s463_s19 }
  0x5b   : > { %216 = vst [vmem:[%s197_s29 + $0x10] sm:$0xff] %v212_v14  ;;  %p461_p5 = pneg %p460_p7  ;;  %p466_p9 = scmp.lt.s32.totalorder %s464_s23, %s458_s24 }
  0x5c   : > { %217 = vst [vmem:[%s197_s29 + $0x18] sm:$0xff] %v213_v15 }
  0x5d   : > { %p467_p0 = por %p466_p9, %p465_p8 }
  0x5f   : > { %p468_p1 = pnand %p467_p0, %p461_p5 }
  0x61   : > { %471 = shalt.err (!%p468_p1)
}
  0x62   : > { %s472_s25 = scalar_lea.hbm %s715_s16, 512  ;;  %s476_s5 = scalar_lea.hbm %s759_s2, 1024 }
  0x63   : > { %p473_p11 = scmp.ne.s32.totalorder %s715_s16, %s472_s25  ;;  %p477_p4 = scmp.lt.u32.totalorder %s715_s16, %s759_s2 }
  0x64   : > { %p478_p10 = scmp.lt.u32.totalorder %s476_s5, %s472_s25  ;;  %p480_p6 = scmp.lt.u32.totalorder %s472_s25, %s715_s16 }
  0x65   : > { %p474_p12 = pnand %p473_p11, %p772_p13 }
  0x66   : > { %p479_p3 = por %p478_p10, %p477_p4 }
  0x67   : > { %p475_p2 = pneg %p474_p12 }
  0x68   : > { %p481_p7 = por %p480_p6, %p479_p3 }
  0x6a   : > { %p482_p5 = pnand %p481_p7, %p475_p2 }
  0x6c   : > { %485 = shalt.err (!%p482_p5)
}
  0x6d   : > { %351 = dma.vmem_to_hbm [thread:$0]  (%p772_p13), %s710_s14, 512, %s715_s16, %s219_s13  }
  0x6e PF: > { %s245_s30 = sand.u32 1, %s516_s9   ;;  %p773_p8 = scmp.ne.s32.totalorder %s765_s22, 0 }
  0x6f   : > { %p774_p9 = scmp.ge.s32.totalorder %s528_s12, 2  ;;  %s246_s3 = scalar_lea.sflag [#allocation4], %s245_s30 }
  0x71   : > { %p361_p0 = pnand %p774_p9, %p773_p8 }
  0x73   : > { %511 = dma.done.wait (!%p361_p0), %s246_s3, 512  }
  0x74   : > { %513 = vsyncadd (!%p361_p0), %s246_s3, 4294966784  ;;  %p18_p1 = scmp.ge.s32.totalorder %s573_s15, 4   ;;  %s775_s9 = smov %s520_s10 }
  0x75   : > { %s776_s10 = smov %s524_s11  ;;  %s777_s11 = smov %s585_s18 }
  0x76   : > { %s778_s12 = smov %s573_s15  ;;  %20 = sbr.rel (!%p18_p1) target bundleno = 7 (0x7), region = 86 }
  0x7d   :  { %251 = vsyncpa [#allocation3], 1 }
  0x7e   :  { %253 = vsyncpa [#allocation3 + $0x1], 1 }
  0x7f   :  { %254 = vsyncpa [#allocation6], 1 }
  0x80   :  { %256 = vsyncpa [#allocation6 + $0x1], 1 }
  0x81   :  { %257 = vsyncpa [#allocation4], 1 }
  0x82   :  { %259 = vsyncpa [#allocation4 + $0x1], 1 }

</bundles_post_ra>
